<compile_context>
chip_gen: v6e
topology: v6e:2x2x1
jax: 0.10.0
libtpu: 0.0.40
codegen_flags: <defaults>
</compile_context>

<pallas_src>
import functools

import jax
import jax.numpy as jnp
from jax.experimental import pallas as pl
from jax.experimental.pallas import tpu as pltpu


# ----------------------------- Pallas kernel -------------------------------- #
def _gem_hpp_kernel(p_ref, x_ref, pool_ref, o_ref, *, eps):
    # p_ref: (1,) f32 in SMEM   x_ref: (TM, HW)   pool_ref: (HW, B)   o_ref: (TM, B)
    p = p_ref[0]
    x = jnp.maximum(x_ref[...], eps)                 # clamp(min=eps)  (x > 0 after this)
    xp = jnp.exp(p * jnp.log(x))                     # x ** p          (EUP)
    acc = jnp.dot(xp, pool_ref[...],                 # per-bin mean    (MXU)
                  preferred_element_type=jnp.float32)
    acc = jnp.maximum(acc, 1e-35)                    # guard: TPU flushes denormals to 0
    o_ref[...] = jnp.exp(jnp.log(acc) * (1.0 / p)).astype(o_ref.dtype)   # ** (1/p)


# ------------------------------- JAX wrapper --------------------------------- #
def _round_up(x, m):
    return ((x + m - 1) // m) * m


def _build_pool_matrix(hw, bin_num):
    """Block-diagonal mean-pooling weights, all bin configs concatenated: [hw, sum(bin_num)]."""
    cols = []
    for b in bin_num:
        assert hw % b == 0, (hw, b)
        l = hw // b
        cols.append(jnp.repeat(jnp.eye(b, dtype=jnp.float32), l, axis=0) / float(l))
    return jnp.concatenate(cols, axis=1)


def gem_hpp(x, p, *, bin_num=(64,), eps=1e-6):
    """GeMHPP forward.  x: [n, c, h, w]  ->  [n, c, sum(bin_num)]."""
    n, c, h, w = x.shape
    hw = h * w
    b_total = int(sum(bin_num))
    pool = _build_pool_matrix(hw, bin_num)           # [hw, b_total], tiny & resident

    M = n * c
    x2 = x.reshape(M, hw)                            # free reshape, lane-dense rows

    # Row-tile size: multiple of 8, <= ~4 MiB per input buffer (safe for the scoped
    # VMEM default on v5e/v6e/v7x with double buffering), and >= 2 grid steps when
    # M allows it so both v7x TensorCores get work.
    bytes_per_row = hw * 4
    tm_cap = max(8, ((4 * 1024 * 1024) // bytes_per_row) // 8 * 8)
    tm = min(tm_cap, _round_up(max(M // 2, 1), 8), _round_up(M, 8))
    Mp = _round_up(M, tm)
    if Mp != M:                                      # pad rows (value irrelevant, sliced off)
        x2 = jnp.concatenate([x2, jnp.ones((Mp - M, hw), x2.dtype)], axis=0)

    p_arr = jnp.asarray(p, jnp.float32).reshape(1)

    out = pl.pallas_call(
        functools.partial(_gem_hpp_kernel, eps=eps),
        out_shape=jax.ShapeDtypeStruct((Mp, b_total), jnp.float32),
        grid_spec=pltpu.PrefetchScalarGridSpec(
            num_scalar_prefetch=0,
            grid=(Mp // tm,),
            in_specs=[
                pl.BlockSpec(memory_space=pltpu.MemorySpace.SMEM),   # p (scalar param)
                pl.BlockSpec((tm, hw), lambda i: (i, 0)),            # x row tile
                pl.BlockSpec((hw, b_total), lambda i: (0, 0)),       # pooling matrix (resident)
            ],
            out_specs=pl.BlockSpec((tm, b_total), lambda i: (i, 0)),
        ),
        compiler_params=pltpu.CompilerParams(
            dimension_semantics=("parallel",),
        ),
    )(p_arr, x2, pool)

    return out[:M].reshape(n, c, b_total)


# ---------------------------------- demo ------------------------------------- #
if __name__ == "__main__":
    n, c, h, w = 2, 32, 64, 16
    bin_num = (64,)
    p = 6.5
    eps = 1e-6

    key = jax.random.PRNGKey(0)
    x = jax.random.normal(key, (n, c, h, w), jnp.float32)

    fn = jax.jit(functools.partial(gem_hpp, bin_num=bin_num, eps=eps))
    out = fn(x, jnp.float32(p))
    jax.block_until_ready(out)

    # pure-JAX reference (same math as the PyTorch module)
    def ref_fn(xx, pp):
        feats = []
        for b in bin_num:
            z = xx.reshape(n, c, b, -1)
            z = jnp.maximum(z, eps) ** pp
            z = jnp.mean(z, axis=-1)
            feats.append(z ** (1.0 / pp))
        return jnp.concatenate(feats, axis=-1)

    expected = ref_fn(x, p)

    assert out.shape == (n, c, sum(bin_num)), out.shape
    assert bool(jnp.all(jnp.isfinite(out)))
    max_err = float(jnp.max(jnp.abs(out - expected)))
    assert max_err < 1e-3, max_err
    print("KERNEL_OK")
</pallas_src>

<mosaic_0001>
module attributes {stable_mosaic.version = 11 : i64} {
  func.func @_gem_hpp_kernel(%arg0: i32, %arg1: memref<1xf32, #tpu.memory_space<smem>>, %arg2: memref<32x1024xf32, #tpu.memory_space<vmem>>, %arg3: memref<1024x64xf32, #tpu.memory_space<vmem>>, %arg4: memref<32x64xf32, #tpu.memory_space<vmem>>) attributes {dimension_semantics = [#tpu.dimension_semantics<parallel>], iteration_bounds = array<i64: 2>, scalar_prefetch = 0 : i64, scratch_operands = 0 : i64, tpu.core_type = #tpu.core_type<tc>, window_params = [{transform_indices = @transform_0, window_bounds = array<i64: 1>}, {transform_indices = @transform_1, window_bounds = array<i64: 32, 1024>}, {pipeline_mode = #tpu.pipeline_mode<synchronous>, transform_indices = @transform_2, window_bounds = array<i64: 1024, 64>}, {transform_indices = @transform_3, window_bounds = array<i64: 32, 64>}]} {
    %c0 = arith.constant 0 : index
    %0 = memref.load %arg1[%c0] : memref<1xf32, #tpu.memory_space<smem>>
    %c0_0 = arith.constant 0 : index
    %c0_1 = arith.constant 0 : index
    %1 = vector.load %arg2[%c0_0, %c0_1] : memref<32x1024xf32, #tpu.memory_space<vmem>>, vector<32x1024xf32>
    %cst = arith.constant 9.99999997E-7 : f32
    %2 = vector.broadcast %cst : f32 to vector<32x1024xf32>
    %3 = arith.maximumf %1, %2 : vector<32x1024xf32>
    %4 = math.log %3 : vector<32x1024xf32>
    %5 = vector.broadcast %0 : f32 to vector<32x1024xf32>
    %6 = arith.mulf %5, %4 : vector<32x1024xf32>
    %7 = math.exp %6 : vector<32x1024xf32>
    %c0_2 = arith.constant 0 : index
    %c0_3 = arith.constant 0 : index
    %8 = vector.load %arg3[%c0_2, %c0_3] : memref<1024x64xf32, #tpu.memory_space<vmem>>, vector<1024x64xf32>
    %cst_4 = arith.constant dense<0.000000e+00> : vector<32x64xf32>
    %9 = tpu.matmul %7, %8, %cst_4 {dimension_numbers = #tpu.dot_dimension_numbers<[1], [0], [0], [1], [0, 0, 1, 1], [], []>} : vector<32x1024xf32>, vector<1024x64xf32>, vector<32x64xf32> -> vector<32x64xf32>
    %cst_5 = arith.constant 1.000000e-35 : f32
    %10 = vector.broadcast %cst_5 : f32 to vector<32x64xf32>
    %11 = arith.maximumf %9, %10 : vector<32x64xf32>
    %12 = math.log %11 : vector<32x64xf32>
    %cst_6 = arith.constant 1.000000e+00 : f32
    %13 = arith.divf %cst_6, %0 : f32
    %14 = vector.broadcast %13 : f32 to vector<32x64xf32>
    %15 = arith.mulf %12, %14 : vector<32x64xf32>
    %16 = math.exp %15 : vector<32x64xf32>
    %c0_7 = arith.constant 0 : index
    %c0_8 = arith.constant 0 : index
    %17 = vector.load %arg4[%c0_7, %c0_8] : memref<32x64xf32, #tpu.memory_space<vmem>>, vector<32x64xf32>
    tpu.vector_store %arg4[%c0_7, %c0_8], %16 {strides = array<i32>} : memref<32x64xf32, #tpu.memory_space<vmem>>, vector<32x64xf32>,
    return
  }
  func.func @transform_0(%arg0: i32) -> i32 {
    %c0_i32 = arith.constant 0 : i32
    %c0_i32_0 = arith.constant 0 : i32
    return %c0_i32 : i32
  }
  func.func @transform_1(%arg0: i32) -> (i32, i32) {
    %c0_i32 = arith.constant 0 : i32
    %c0_i32_0 = arith.constant 0 : i32
    return %arg0, %c0_i32 : i32, i32
  }
  func.func @transform_2(%arg0: i32) -> (i32, i32) {
    %c0_i32 = arith.constant 0 : i32
    %c0_i32_0 = arith.constant 0 : i32
    %c0_i32_1 = arith.constant 0 : i32
    return %c0_i32, %c0_i32_0 : i32, i32
  }
  func.func @transform_3(%arg0: i32) -> (i32, i32) {
    %c0_i32 = arith.constant 0 : i32
    %c0_i32_0 = arith.constant 0 : i32
    return %arg0, %c0_i32 : i32, i32
  }
}

</mosaic_0001>

<bundles_post_ra>
// kernel: gem_hpp.1
= control target key start
LH: loop header
LB: loop body
LE: loop exit
PB: predicated region body
PF: predicated region fallthrough
CT: control target
= control target key end

     0   :  { %s2024_s0 = inlined_call_operand.<no memory space> [shape: f32[1], index: 0, kind: input, shape index: {}]   ;;  %s2025_s1 = inlined_call_operand.vmem [shape: f32[64,1024], index: 1, kind: input, shape index: {}]   ;;  %s2026_s2 = inlined_call_operand.vmem [shape: f32[1024,64], index: 2, kind: input, shape index: {}]   ;;  %s2027_s3 = inlined_call_operand.hbm [shape: f32[64,64], index: 3, kind: output, shape index: {}]  }
   0x1   :  { %8 = sst [smem:[#allocation2]] %s2024_s0 }
   0x2   :  { %9 = vsyncpa [#allocation4], 0 }
   0x3   :  { %11 = vsyncpa [#allocation4 + $0x1], 0  ;;  %s1447_s14 = smov 0   ;;  %s1449_s15 = smov 0  }
   0x4   :  { %s1451_s16 = smov 0   ;;  %s1453_s17 = smov 0  }
   0x5 LB: > { %s1468_s0 = sadd.s32 4294967295, %s1419_s17   ;;  %s979_s18 = sadd.s32 4294967294, %s1419_s17   ;;  %s1419_s17 = sphi %s1453_s17, %s2034_s17   ;;  %s1415_s16 = sphi %s1451_s16, %s2033_s16   ;;  %s1411_s15 = sphi %s1449_s15, %s2032_s15   ;;  %s1407_s14 = sphi %s1447_s14, %s2031_s14  }
   0x6   : > { %s1472_s19 = sadd.s32 1, %s1419_s17   ;;  %s92_s20 = sadd.s32 1, %s1415_s16 }
   0x7   : > { %s89_s21 = ssub.s32 %s1419_s17, %s1472_s19  ;;  %p102_p0 = scmp.ne.s32.totalorder %s1415_s16, %s1411_s15 }
   0x8   : > { %p90_p1 = scmp.eq.s32.totalorder %s89_s21, 0  ;;  %p103_p2 = scmp.eq.s32.totalorder %s1468_s0, 1 }
   0x9   : > { %p108_p3 = scmp.ne.s32.totalorder %s1411_s15, %s1407_s14  ;;  %p109_p4 = scmp.eq.s32.totalorder %s979_s18, 1 }
   0xa   : > { %s1483_s22 = scalar_select %p90_p1, %s1415_s16, %s92_s20  }
   0xb   : > { %p1485_p5 = por %p103_p2, %p102_p0  ;;  %p1489_p6 = por %p109_p4, %p108_p3 }
   0xc   : > { %p982_p7 = scmp.ge.s32.totalorder %s1419_s17, 1  ;;  %p143_p8 = scmp.lt.s32.totalorder %s1419_s17, 3 }
   0xe   : > { %p144_p9 = pnand %p982_p7, %p143_p8 }
   0xf   : > { %s984_s7 = sshll.u32 (!%p144_p9), %s1468_s0, 2  ;;  %s176_s4 = sld [smem:[#allocation2]] (!%p144_p9) }
  0x10   : > { %147 = sbr.rel (%p144_p9) target bundleno = 389 (0x185), region = 32  ;;  %p1558_p10 = scmp.lt.s32.totalorder (!%p144_p9), %s984_s7, 7 }
  0x11   : > { %s165_s6 = sand.u32 (!%p144_p9), 1, %s1411_s15  }
  0x12   : > { %s983_s28 = sshll.u32 (!%p144_p9), %s165_s6, 5  ;;  %s1984_s12 = scalar_lea.sflag (!%p144_p9), [#allocation4], %s165_s6 }
  0x15   : > { %v433_v0 = vld [vmem:[%s2026_s2 + $0xf8] sm:$0xff]  ;;  %v432_v4 = vld [vmem:[%s2026_s2 + $0xf0] sm:$0xff]  ;;  %v431_v8 = vld [vmem:[%s2026_s2 + $0xe8] sm:$0xff]  ;;  %s2036_s7 = smov (!%p1558_p10, %s984_s7), 7  ;;  %vm898_vm0 = vcmask 523264  }
  0x16   : > { %v465_v1 = vld [vmem:[%s2026_s2 + $0x1f8] sm:$0xff]  ;;  %994 = vmatprep.subr.mxu0 %v433_v0  ;;  %v464_v5 = vld [vmem:[%s2026_s2 + $0x1f0] sm:$0xff]  ;;  %v463_v9 = vld [vmem:[%s2026_s2 + $0x1e8] sm:$0xff]  ;;  %s992_s25 = sshll.u32 %s2036_s7, 6  ;;  %s993_s7 = sshll.u32 %s1468_s0, 9 }
  0x17   : > { %v417_v2 = vld [vmem:[%s2026_s2 + $0x78] sm:$0xff]  ;;  %1038 = vmatprep.subr.mxu1 %v465_v1  ;;  %v416_v6 = vld [vmem:[%s2026_s2 + $0x70] sm:$0xff]  ;;  %v415_v10 = vld [vmem:[%s2026_s2 + $0x68] sm:$0xff]  ;;  %s1638_s13 = scalar_lea.vmem %s2025_s1, %s992_s25  ;;  %s1979_s11 = scalar_lea.hbm %s2027_s3, %s993_s7 }
  0x18   : > { %v449_v3 = vld [vmem:[%s2026_s2 + $0x178] sm:$0xff]  ;;  %995 = vmatpush3.msra.mxu0 %v417_v2  ;;  %v448_v7 = vld [vmem:[%s2026_s2 + $0x170] sm:$0xff]  ;;  %v447_v11 = vld [vmem:[%s2026_s2 + $0x168] sm:$0xff]  ;;  %s1421_s0 = smov [#allocation3]  }
  0x19   : > { %1039 = vmatpush3.msra.mxu1 %v449_v3  ;;  %996 = vmatprep.subr.mxu0 %v432_v4  ;;  %v430_v12 = vld [vmem:[%s2026_s2 + $0xe0] sm:$0xff]  ;;  %v429_v16 = vld [vmem:[%s2026_s2 + $0xd8] sm:$0xff]  ;;  %v428_v20 = vld [vmem:[%s2026_s2 + $0xd0] sm:$0xff]  ;;  %s1363_s20 = sshll.u32 %s1421_s0, 4  ;;  %s1364_s20 = int_to_ptr.vmem [resolvable:$false] %s1363_s20 }
  0x1a   : > { %1040 = vmatprep.subr.mxu1 %v464_v5  ;;  %997 = vmatpush3.msra.mxu0 %v416_v6  ;;  %v462_v13 = vld [vmem:[%s2026_s2 + $0x1e0] sm:$0xff]  ;;  %v461_v17 = vld [vmem:[%s2026_s2 + $0x1d8] sm:$0xff]  ;;  %v460_v21 = vld [vmem:[%s2026_s2 + $0x1d0] sm:$0xff]  ;;  %s1365_s21 = scalar_lea.vmem %s1364_s20, 1024 }
  0x1b   : > { %1041 = vmatpush3.msra.mxu1 %v448_v7  ;;  %998 = vmatprep.subr.mxu0 %v431_v8  ;;  %v414_v14 = vld [vmem:[%s2026_s2 + $0x60] sm:$0xff]  ;;  %v413_v18 = vld [vmem:[%s2026_s2 + $0x58] sm:$0xff]  ;;  %v412_v22 = vld [vmem:[%s2026_s2 + $0x50] sm:$0xff] }
  0x1c   : > { %1042 = vmatprep.subr.mxu1 %v463_v9  ;;  %v446_v15 = vld [vmem:[%s2026_s2 + $0x160] sm:$0xff]  ;;  %999 = vmatpush3.msra.mxu0 %v415_v10  ;;  %v445_v19 = vld [vmem:[%s2026_s2 + $0x158] sm:$0xff]  ;;  %v444_v23 = vld [vmem:[%s2026_s2 + $0x150] sm:$0xff] }
  0x1d   : > { %1043 = vmatpush3.msra.mxu1 %v447_v11  ;;  %1000 = vmatprep.subr.mxu0 %v430_v12  ;;  %v427_v24 = vld [vmem:[%s2026_s2 + $0xc8] sm:$0xff]  ;;  %v426_v28 = vld [vmem:[%s2026_s2 + $0xc0] sm:$0xff]  ;;  %v425_v32 = vld [vmem:[%s2026_s2 + $0xb8] sm:$0xff] }
  0x1e   : > { %1044 = vmatprep.subr.mxu1 %v462_v13  ;;  %1001 = vmatpush3.msra.mxu0 %v414_v14  ;;  %v459_v25 = vld [vmem:[%s2026_s2 + $0x1c8] sm:$0xff]  ;;  %v458_v29 = vld [vmem:[%s2026_s2 + $0x1c0] sm:$0xff]  ;;  %v457_v33 = vld [vmem:[%s2026_s2 + $0x1b8] sm:$0xff] }
  0x1f   : > { %1045 = vmatpush3.msra.mxu1 %v446_v15  ;;  %1002 = vmatprep.subr.mxu0 %v429_v16  ;;  %v411_v26 = vld [vmem:[%s2026_s2 + $0x48] sm:$0xff]  ;;  %v410_v30 = vld [vmem:[%s2026_s2 + $0x40] sm:$0xff]  ;;  %v409_v34 = vld [vmem:[%s2026_s2 + $0x38] sm:$0xff] }
  0x20   : > { %1046 = vmatprep.subr.mxu1 %v461_v17  ;;  %1003 = vmatpush3.msra.mxu0 %v413_v18  ;;  %v443_v27 = vld [vmem:[%s2026_s2 + $0x148] sm:$0xff]  ;;  %v442_v31 = vld [vmem:[%s2026_s2 + $0x140] sm:$0xff]  ;;  %v441_v35 = vld [vmem:[%s2026_s2 + $0x138] sm:$0xff]  ;;  %v1720_v17 = vstv %s176_s4 }
  0x21   : > { %1047 = vmatpush3.msra.mxu1 %v445_v19  ;;  %1004 = vmatprep.subr.mxu0 %v428_v20  ;;  %v424_v36 = vld [vmem:[%s2026_s2 + $0xb0] sm:$0xff]  ;;  %v423_v40 = vld [vmem:[%s2026_s2 + $0xa8] sm:$0xff]  ;;  %v422_v44 = vld [vmem:[%s2026_s2 + $0xa0] sm:$0xff] }
  0x22   : > { %1048 = vmatprep.subr.mxu1 %v460_v21  ;;  %1005 = vmatpush3.msra.mxu0 %v412_v22  ;;  %v456_v37 = vld [vmem:[%s2026_s2 + $0x1b0] sm:$0xff]  ;;  %v455_v41 = vld [vmem:[%s2026_s2 + $0x1a8] sm:$0xff]  ;;  %v454_v45 = vld [vmem:[%s2026_s2 + $0x1a0] sm:$0xff] }
  0x23   : > { %1049 = vmatpush3.msra.mxu1 %v444_v23  ;;  %1006 = vmatprep.subr.mxu0 %v427_v24  ;;  %v408_v38 = vld [vmem:[%s2026_s2 + $0x30] sm:$0xff]  ;;  %v407_v42 = vld [vmem:[%s2026_s2 + $0x28] sm:$0xff]  ;;  %v406_v46 = vld [vmem:[%s2026_s2 + $0x20] sm:$0xff] }
  0x24   : > { %1050 = vmatprep.subr.mxu1 %v459_v25  ;;  %1007 = vmatpush3.msra.mxu0 %v411_v26  ;;  %v440_v39 = vld [vmem:[%s2026_s2 + $0x130] sm:$0xff]  ;;  %v439_v43 = vld [vmem:[%s2026_s2 + $0x128] sm:$0xff]  ;;  %v438_v47 = vld [vmem:[%s2026_s2 + $0x120] sm:$0xff] }
  0x25   : > { %1051 = vmatpush3.msra.mxu1 %v443_v27  ;;  %1008 = vmatprep.subr.mxu0 %v426_v28  ;;  %v421_v48 = vld [vmem:[%s2026_s2 + $0x98] sm:$0xff]  ;;  %v178_v49 = vld [vmem:[%s1638_s13 + $0x8] sm:$0xff]  ;;  %v177_v56 = vld [vmem:[%s1638_s13] sm:$0xff] }
  0x26   : > { %1052 = vmatprep.subr.mxu1 %v458_v29  ;;  %1009 = vmatpush3.msra.mxu0 %v410_v30  ;;  %v180_v50 = vld [vmem:[%s1638_s13 + $0x18] sm:$0xff]  ;;  %v210_v53 = vmax.f32 %v178_v49, 1e-06  ;;  %v179_v57 = vld [vmem:[%s1638_s13 + $0x10] sm:$0xff]  ;;  %v209_v60 = vmax.f32 %v177_v56, 1e-06 }
  0x27   : > { %1053 = vmatpush3.msra.mxu1 %v442_v31  ;;  %1010 = vmatprep.subr.mxu0 %v425_v32  ;;  %v453_v51 = vld [vmem:[%s2026_s2 + $0x198] sm:$0xff]  ;;  %v212_v54 = vmax.f32 %v180_v50, 1e-06  ;;  %v420_v58 = vld [vmem:[%s2026_s2 + $0x90] sm:$0xff]  ;;  %v211_v61 = vmax.f32 %v179_v57, 1e-06 }
  0x28   : > { %1054 = vmatprep.subr.mxu1 %v457_v33  ;;  %1011 = vmatpush3.msra.mxu0 %v409_v34  ;;  %v405_v52 = vld [vmem:[%s2026_s2 + $0x18] sm:$0xff]  ;;  %v452_v59 = vld [vmem:[%s2026_s2 + $0x190] sm:$0xff]  ;;  %1213 = vlog2.f32 %v210_v53  ;;  %v419_v0 = vld [vmem:[%s2026_s2 + $0x88] sm:$0xff] }
  0x29   : > { %1055 = vmatpush3.msra.mxu1 %v441_v35  ;;  %1012 = vmatprep.subr.mxu0 %v424_v36  ;;  %v437_v55 = vld [vmem:[%s2026_s2 + $0x118] sm:$0xff]  ;;  %v404_v62 = vld [vmem:[%s2026_s2 + $0x10] sm:$0xff]  ;;  %1215 = vlog2.f32 %v212_v54  ;;  %v451_v1 = vld [vmem:[%s2026_s2 + $0x188] sm:$0xff] }
  0x2a   : > { %1056 = vmatprep.subr.mxu1 %v456_v37  ;;  %1013 = vmatpush3.msra.mxu0 %v408_v38  ;;  %v436_v63 = vld [vmem:[%s2026_s2 + $0x110] sm:$0xff]  ;;  %1217 = vlog2.f32 %v209_v60  ;;  %v403_v2 = vld [vmem:[%s2026_s2 + $0x8] sm:$0xff]  ;;  %v418_v4 = vld [vmem:[%s2026_s2 + $0x80] sm:$0xff] }
  0x2b   : > { %1057 = vmatpush3.msra.mxu1 %v440_v39  ;;  %1014 = vmatprep.subr.mxu0 %v423_v40  ;;  %v435_v3 = vld [vmem:[%s2026_s2 + $0x108] sm:$0xff]  ;;  %1219 = vlog2.f32 %v211_v61  ;;  %v450_v5 = vld [vmem:[%s2026_s2 + $0x180] sm:$0xff]  ;;  %v497_v8 = vld [vmem:[%s2026_s2 + $0x2f8] sm:$0xff] }
  0x2c   : > { %1058 = vmatprep.subr.mxu1 %v455_v41  ;;  %1015 = vmatpush3.msra.mxu0 %v407_v42  ;;  %v402_v6 = vld [vmem:[%s2026_s2] sm:$0xff]  ;;  %v529_v9 = vld [vmem:[%s2026_s2 + $0x3f8] sm:$0xff]  ;;  %v186_v10 = vld [vmem:[%s1638_s13 + $0x48] sm:$0xff] }
  0x2d   : > { %1059 = vmatpush3.msra.mxu1 %v439_v43  ;;  %1016 = vmatprep.subr.mxu0 %v422_v44  ;;  %v434_v7 = vld [vmem:[%s2026_s2 + $0x100] sm:$0xff]  ;;  %v218_v11 = vmax.f32 %v186_v10, 1e-06  ;;  %v188_v12 = vld [vmem:[%s1638_s13 + $0x58] sm:$0xff]  ;;  %v187_v15 = vld [vmem:[%s1638_s13 + $0x50] sm:$0xff] }
  0x2e   : > { %1060 = vmatprep.subr.mxu1 %v454_v45  ;;  %1017 = vmatpush3.msra.mxu0 %v406_v46  ;;  %v220_v13 = vmax.f32 %v188_v12, 1e-06  ;;  %v185_v14 = vld [vmem:[%s1638_s13 + $0x40] sm:$0xff]  ;;  %v219_v19 = vmax.f32 %v187_v15, 1e-06  ;;  %v194_v24 = vld [vmem:[%s1638_s13 + $0x88] sm:$0xff] }
  0x2f   : > { %1061 = vmatpush3.msra.mxu1 %v438_v47  ;;  %1018 = vmatprep.subr.mxu0 %v421_v48  ;;  %1221 = vlog2.f32 %v218_v11  ;;  %v217_v18 = vmax.f32 %v185_v14, 1e-06  ;;  %v196_v25 = vld [vmem:[%s1638_s13 + $0x98] sm:$0xff]  ;;  %v226_v29 = vmax.f32 %v194_v24, 1e-06  ;;  %v193_v33 = vld [vmem:[%s1638_s13 + $0x80] sm:$0xff] }
  0x30   : > { %1062 = vmatprep.subr.mxu1 %v453_v51  ;;  %1019 = vmatpush3.msra.mxu0 %v405_v52  ;;  %1223 = vlog2.f32 %v220_v13  ;;  %v228_v32 = vmax.f32 %v196_v25, 1e-06  ;;  %v195_v36 = vld [vmem:[%s1638_s13 + $0x90] sm:$0xff]  ;;  %v225_v40 = vmax.f32 %v193_v33, 1e-06  ;;  %v202_v41 = vld [vmem:[%s1638_s13 + $0xc8] sm:$0xff] }
  0x31   : > { %1063 = vmatpush3.msra.mxu1 %v437_v55  ;;  %1020 = vmatprep.subr.mxu0 %v420_v58  ;;  %1225 = vlog2.f32 %v217_v18  ;;  %v227_v43 = vmax.f32 %v195_v36, 1e-06  ;;  %v204_v44 = vld [vmem:[%s1638_s13 + $0xd8] sm:$0xff]  ;;  %v234_v45 = vmax.f32 %v202_v41, 1e-06  ;;  %v201_v46 = vld [vmem:[%s1638_s13 + $0xc0] sm:$0xff] }
  0x32   : > { %1064 = vmatprep.subr.mxu1 %v452_v59  ;;  %1021 = vmatpush3.msra.mxu0 %v404_v62  ;;  %1227 = vlog2.f32 %v219_v19  ;;  %v203_v47 = vld [vmem:[%s1638_s13 + $0xd0] sm:$0xff]  ;;  %v236_v48 = vmax.f32 %v204_v44, 1e-06  ;;  %v233_v49 = vmax.f32 %v201_v46, 1e-06  ;;  %v182_v54 = vld [vmem:[%s1638_s13 + $0x28] sm:$0xff] }
  0x33   : > { %1065 = vmatpush3.msra.mxu1 %v436_v63  ;;  %1022 = vmatprep.subr.mxu0 %v419_v0  ;;  %1229 = vlog2.f32 %v226_v29  ;;  %v235_v50 = vmax.f32 %v203_v47, 1e-06  ;;  %v184_v55 = vld [vmem:[%s1638_s13 + $0x38] sm:$0xff]  ;;  %v214_v58 = vmax.f32 %v182_v54, 1e-06  ;;  %v181_v63 = vld [vmem:[%s1638_s13 + $0x20] sm:$0xff] }
  0x34   : > { %1066 = vmatprep.subr.mxu1 %v451_v1  ;;  %1023 = vmatpush3.msra.mxu0 %v403_v2  ;;  %1231 = vlog2.f32 %v228_v32  ;;  %v216_v59 = vmax.f32 %v184_v55, 1e-06  ;;  %v213_v2 = vmax.f32 %v181_v63, 1e-06  ;;  %v190_v11 = vld [vmem:[%s1638_s13 + $0x68] sm:$0xff]  ;;  %v481_v18 = vld [vmem:[%s2026_s2 + $0x278] sm:$0xff] }
  0x35   : > { %1067 = vmatpush3.msra.mxu1 %v435_v3  ;;  %1024 = vmatprep.subr.mxu0 %v418_v4  ;;  %v1214_v16 = vpop.eup %1213  ;;  %v183_v3 = vld [vmem:[%s1638_s13 + $0x30] sm:$0xff]  ;;  %v513_v19 = vld [vmem:[%s2026_s2 + $0x378] sm:$0xff]  ;;  %v511_v44 = vld [vmem:[%s2026_s2 + $0x368] sm:$0xff] }
  0x36   : > { %1068 = vmatprep.subr.mxu1 %v450_v5  ;;  %1025 = vmatpush3.msra.mxu0 %v402_v6  ;;  %v1216_v20 = vpop.eup %1215  ;;  %v244_v21 = vmul.f32 0.6931472, %v1214_v16  ;;  %v215_v15 = vmax.f32 %v183_v3, 1e-06  ;;  %v496_v24 = vld [vmem:[%s2026_s2 + $0x2f0] sm:$0xff]  ;;  %v493_v55 = vld [vmem:[%s2026_s2 + $0x2d8] sm:$0xff] }
  0x37   : > { %1069 = vmatpush3.msra.mxu1 %v434_v7  ;;  %1082 = vmatprep.subr.mxu0 %v497_v8  ;;  %v1218_v22 = vpop.eup %1217  ;;  %v248_v23 = vmul.f32 0.6931472, %v1216_v20  ;;  %v528_v25 = vld [vmem:[%s2026_s2 + $0x3f0] sm:$0xff] }
  0x38   : > { %1126 = vmatprep.subr.mxu1 %v529_v9  ;;  %v1220_v26 = vpop.eup %1219  ;;  %v307_v27 = vmul.f32 %v1720_v17, %v244_v21  ;;  %v242_v28 = vmul.f32 0.6931472, %v1218_v22  ;;  %v192_v22 = vld [vmem:[%s1638_s13 + $0x78] sm:$0xff]  ;;  %v480_v29 = vld [vmem:[%s2026_s2 + $0x270] sm:$0xff] }
  0x39   : > { %v309_v30 = vmul.f32 %v1720_v17, %v248_v23  ;;  %v246_v31 = vmul.f32 0.6931472, %v1220_v26  ;;  %v191_v32 = vld [vmem:[%s1638_s13 + $0x70] sm:$0xff] }
  0x3a   : > { %v340_v34 = vmul.f32 1.442695, %v307_v27  ;;  %v306_v35 = vmul.f32 %v1720_v17, %v242_v28  ;;  %v189_v27 = vld [vmem:[%s1638_s13 + $0x60] sm:$0xff]  ;;  %v223_v47 = vmax.f32 %v191_v32, 1e-06  ;;  %v524_v3 = vld [vmem:[%s2026_s2 + $0x3d0] sm:$0xff] }
  0x3b   : > { %v344_v37 = vmul.f32 1.442695, %v309_v30  ;;  %v308_v38 = vmul.f32 %v1720_v17, %v246_v31  ;;  %v222_v31 = vmax.f32 %v190_v11, 1e-06  ;;  %v200_v32 = vld [vmem:[%s1638_s13 + $0xb8] sm:$0xff] }
  0x3c   : > { %1233 = vpow2.f32 %v340_v34  ;;  %v338_v39 = vmul.f32 1.442695, %v306_v35  ;;  %v1222_v51 = vpop.eup %1221  ;;  %v512_v34 = vld [vmem:[%s2026_s2 + $0x370] sm:$0xff]  ;;  %v495_v35 = vld [vmem:[%s2026_s2 + $0x2e8] sm:$0xff] }
  0x3d   : > { %1235 = vpow2.f32 %v344_v37  ;;  %v342_v42 = vmul.f32 1.442695, %v308_v38  ;;  %v1224_v52 = vpop.eup %1223  ;;  %v260_v53 = vmul.f32 0.6931472, %v1222_v51  ;;  %v224_v37 = vmax.f32 %v192_v22, 1e-06 }
  0x3e   : > { %1237 = vpow2.f32 %v338_v39  ;;  %v1226_v56 = vpop.eup %1225  ;;  %v264_v57 = vmul.f32 0.6931472, %v1224_v52  ;;  %v527_v39 = vld [vmem:[%s2026_s2 + $0x3e8] sm:$0xff]  ;;  %v510_v51 = vld [vmem:[%s2026_s2 + $0x360] sm:$0xff] }
  0x3f   : > { %1239 = vpow2.f32 %v342_v42  ;;  %v1228_v60 = vpop.eup %1227  ;;  %v315_v61 = vmul.f32 %v1720_v17, %v260_v53  ;;  %v258_v62 = vmul.f32 0.6931472, %v1226_v56  ;;  %v221_v42 = vmax.f32 %v189_v27, 1e-06  ;;  %v525_v56 = vld [vmem:[%s2026_s2 + $0x3d8] sm:$0xff]  ;;  %v507_v22 = vld [vmem:[%s2026_s2 + $0x348] sm:$0xff] }
  0x40   : > { %1241 = vlog2.f32 %v225_v40  ;;  %v317_v0 = vmul.f32 %v1720_v17, %v264_v57  ;;  %v262_v1 = vmul.f32 0.6931472, %v1228_v60  ;;  %v1230_v4 = vpop.eup %1229  ;;  %v479_v40 = vld [vmem:[%s2026_s2 + $0x268] sm:$0xff]  ;;  %v477_v57 = vld [vmem:[%s2026_s2 + $0x258] sm:$0xff] }
  0x41   : > { %1243 = vlog2.f32 %v227_v43  ;;  %v356_v5 = vmul.f32 1.442695, %v315_v61  ;;  %v314_v6 = vmul.f32 %v1720_v17, %v258_v62  ;;  %v1232_v7 = vpop.eup %1231  ;;  %v276_v10 = vmul.f32 0.6931472, %v1230_v4  ;;  %v509_v61 = vld [vmem:[%s2026_s2 + $0x358] sm:$0xff]  ;;  %v492_v62 = vld [vmem:[%s2026_s2 + $0x2d0] sm:$0xff] }
  0x42   : > { %1245 = vlog2.f32 %v234_v45  ;;  %v360_v8 = vmul.f32 1.442695, %v317_v0  ;;  %v316_v9 = vmul.f32 %v1720_v17, %v262_v1  ;;  %v280_v14 = vmul.f32 0.6931472, %v1232_v7  ;;  %v494_v45 = vld [vmem:[%s2026_s2 + $0x2e0] sm:$0xff]  ;;  %v476_v4 = vld [vmem:[%s2026_s2 + $0x250] sm:$0xff] }
  0x43   : > { %1247 = vlog2.f32 %v236_v48  ;;  %v354_v13 = vmul.f32 1.442695, %v314_v6  ;;  %v323_v21 = vmul.f32 %v1720_v17, %v276_v10  ;;  %v491_v10 = vld [vmem:[%s2026_s2 + $0x2c8] sm:$0xff] }
  0x44   : > { %1249 = vlog2.f32 %v233_v49  ;;  %v358_v20 = vmul.f32 1.442695, %v316_v9  ;;  %v325_v26 = vmul.f32 %v1720_v17, %v280_v14  ;;  %v526_v49 = vld [vmem:[%s2026_s2 + $0x3e0] sm:$0xff]  ;;  %v508_v9 = vld [vmem:[%s2026_s2 + $0x350] sm:$0xff] }
  0x45   : > { %1251 = vlog2.f32 %v235_v50  ;;  %v372_v30 = vmul.f32 1.442695, %v323_v21  ;;  %v478_v50 = vld [vmem:[%s2026_s2 + $0x260] sm:$0xff] }
  0x46   : > { %1253 = vlog2.f32 %v214_v58  ;;  %v376_v36 = vmul.f32 1.442695, %v325_v26  ;;  %v198_v26 = vld [vmem:[%s1638_s13 + $0xa8] sm:$0xff] }
  0x47   : > { %1255 = vlog2.f32 %v216_v59 }
  0x48   : > { %1257 = vlog2.f32 %v213_v2 }
  0x49   : > { %v1234_v12 = vpop.eup %1233  ;;  %1259 = vpow2.f32 %v356_v5 }
  0x4a   : > { %v1236_v16 = vpop.eup %1235  ;;  %594 = vmatprep.mubr.f32.mxu0 %v1234_v12  ;;  %1261 = vpow2.f32 %v360_v8 }
  0x4b   : > { %v1238_v23 = vpop.eup %1237  ;;  %679 = vmatprep.mubr.f32.mxu1 %v1236_v16  ;;  %1263 = vpow2.f32 %v354_v13  ;;  %v475_v16 = vld [vmem:[%s2026_s2 + $0x248] sm:$0xff] }
  0x4c   : > { %v1240_v28 = vpop.eup %1239  ;;  %595 = vmatmul.mubr.f32.vlgmr.msra.gmra.mxu0 %v1238_v23  ;;  %1265 = vpow2.f32 %v358_v20 }
  0x4d   : > { %v1242_v33 = vpop.eup %1241  ;;  %680 = vmatmul.mubr.f32.vlgmr.msra.gmra.mxu1 %v1240_v28  ;;  %1083 = vmatpush3.msra.mxu0 %v481_v18  ;;  %1267 = vlog2.f32 %v215_v15  ;;  %v523_v15 = vld [vmem:[%s2026_s2 + $0x3c8] sm:$0xff]  ;;  %v490_v28 = vld [vmem:[%s2026_s2 + $0x2c0] sm:$0xff] }
  0x4e   : > { %v1244_v38 = vpop.eup %1243  ;;  %1127 = vmatpush3.msra.mxu1 %v513_v19  ;;  %1084 = vmatprep.subr.mxu0 %v496_v24  ;;  %1269 = vpow2.f32 %v372_v30  ;;  %v274_v41 = vmul.f32 0.6931472, %v1242_v33 }
  0x4f   : > { %v1246_v43 = vpop.eup %1245  ;;  %1128 = vmatprep.subr.mxu1 %v528_v25  ;;  %1085 = vmatpush3.msra.mxu0 %v480_v29  ;;  %1271 = vpow2.f32 %v376_v36  ;;  %v278_v46 = vmul.f32 0.6931472, %v1244_v38  ;;  %v522_v29 = vld [vmem:[%s2026_s2 + $0x3c0] sm:$0xff] }
  0x50   : > { %v1248_v48 = vpop.eup %1247  ;;  %1129 = vmatpush3.msra.mxu1 %v512_v34  ;;  %1086 = vmatprep.subr.mxu0 %v495_v35  ;;  %v322_v52 = vmul.f32 %v1720_v17, %v274_v41  ;;  %v292_v53 = vmul.f32 0.6931472, %v1246_v43  ;;  %1273 = vlog2.f32 %v222_v31  ;;  %v474_v34 = vld [vmem:[%s2026_s2 + $0x240] sm:$0xff]  ;;  %v199_v43 = vld [vmem:[%s1638_s13 + $0xb0] sm:$0xff] }
  0x51   : > { %v1250_v54 = vpop.eup %1249  ;;  %1130 = vmatprep.subr.mxu1 %v527_v39  ;;  %1087 = vmatpush3.msra.mxu0 %v479_v40  ;;  %v324_v58 = vmul.f32 %v1720_v17, %v278_v46  ;;  %v296_v59 = vmul.f32 0.6931472, %v1248_v48  ;;  %1275 = vlog2.f32 %v224_v37  ;;  %v506_v35 = vld [vmem:[%s2026_s2 + $0x340] sm:$0xff]  ;;  %v489_v40 = vld [vmem:[%s2026_s2 + $0x2b8] sm:$0xff] }
  0x52   : > { %v1252_v60 = vpop.eup %1251  ;;  %1131 = vmatpush3.msra.mxu1 %v511_v44  ;;  %1088 = vmatprep.subr.mxu0 %v494_v45  ;;  %v370_v63 = vmul.f32 1.442695, %v322_v52  ;;  %v331_v0 = vmul.f32 %v1720_v17, %v292_v53  ;;  %v290_v1 = vmul.f32 0.6931472, %v1250_v54  ;;  %1277 = vlog2.f32 %v221_v42  ;;  %v197_v38 = vld [vmem:[%s1638_s13 + $0xa0] sm:$0xff]  ;;  %v521_v45 = vld [vmem:[%s2026_s2 + $0x3b8] sm:$0xff] }
  0x53   : > { %v1254_v2 = vpop.eup %1253  ;;  %1132 = vmatprep.subr.mxu1 %v526_v49  ;;  %1089 = vmatpush3.msra.mxu0 %v478_v50  ;;  %v374_v5 = vmul.f32 1.442695, %v324_v58  ;;  %v333_v6 = vmul.f32 %v1720_v17, %v296_v59  ;;  %v294_v7 = vmul.f32 0.6931472, %v1252_v60  ;;  %1279 = vlog2.f32 %v223_v47  ;;  %v473_v49 = vld [vmem:[%s2026_s2 + $0x238] sm:$0xff]  ;;  %v206_v52 = vld [vmem:[%s1638_s13 + $0xe8] sm:$0xff] }
  0x54   : > { %v1256_v8 = vpop.eup %1255  ;;  %1133 = vmatpush3.msra.mxu1 %v510_v51  ;;  %1090 = vmatprep.subr.mxu0 %v493_v55  ;;  %1281 = vpow2.f32 %v370_v63  ;;  %v388_v11 = vmul.f32 1.442695, %v331_v0  ;;  %v330_v12 = vmul.f32 %v1720_v17, %v290_v1  ;;  %v252_v13 = vmul.f32 0.6931472, %v1254_v2  ;;  %v505_v54 = vld [vmem:[%s2026_s2 + $0x338] sm:$0xff]  ;;  %v488_v58 = vld [vmem:[%s2026_s2 + $0x2b0] sm:$0xff] }
  0x55   : > { %v1258_v14 = vpop.eup %1257  ;;  %1134 = vmatprep.subr.mxu1 %v525_v56  ;;  %1091 = vmatpush3.msra.mxu0 %v477_v57  ;;  %1283 = vpow2.f32 %v374_v5  ;;  %v392_v18 = vmul.f32 1.442695, %v333_v6  ;;  %v332_v19 = vmul.f32 %v1720_v17, %v294_v7  ;;  %v256_v20 = vmul.f32 0.6931472, %v1256_v8  ;;  %v208_v56 = vld [vmem:[%s1638_s13 + $0xf8] sm:$0xff]  ;;  %v520_v59 = vld [vmem:[%s2026_s2 + $0x3b0] sm:$0xff] }
  0x56   : > { %v1260_v21 = vpop.eup %1259  ;;  %1135 = vmatpush3.msra.mxu1 %v509_v61  ;;  %1092 = vmatprep.subr.mxu0 %v492_v62  ;;  %1285 = vpow2.f32 %v388_v11  ;;  %v386_v23 = vmul.f32 1.442695, %v330_v12  ;;  %v311_v24 = vmul.f32 %v1720_v17, %v252_v13  ;;  %v250_v25 = vmul.f32 0.6931472, %v1258_v14  ;;  %v472_v60 = vld [vmem:[%s2026_s2 + $0x230] sm:$0xff]  ;;  %v487_v0 = vld [vmem:[%s2026_s2 + $0x2a8] sm:$0xff] }
  0x57   : > { %v1262_v27 = vpop.eup %1261  ;;  %1136 = vmatprep.subr.mxu1 %v524_v3  ;;  %1093 = vmatpush3.msra.mxu0 %v476_v4  ;;  %1287 = vpow2.f32 %v392_v18  ;;  %v390_v30 = vmul.f32 1.442695, %v332_v19  ;;  %v313_v31 = vmul.f32 %v1720_v17, %v256_v20  ;;  %v230_v42 = vmax.f32 %v198_v26, 1e-06  ;;  %v504_v63 = vld [vmem:[%s2026_s2 + $0x330] sm:$0xff]  ;;  %v519_v8 = vld [vmem:[%s2026_s2 + $0x3a8] sm:$0xff] }
  0x58   : > { %v1264_v33 = vpop.eup %1263  ;;  %1137 = vmatpush3.msra.mxu1 %v508_v9  ;;  %1094 = vmatprep.subr.mxu0 %v491_v10  ;;  %1289 = vpow2.f32 %v386_v23  ;;  %v348_v36 = vmul.f32 1.442695, %v311_v24  ;;  %v310_v37 = vmul.f32 %v1720_v17, %v250_v25  ;;  %v232_v47 = vmax.f32 %v200_v32, 1e-06  ;;  %v471_v12 = vld [vmem:[%s2026_s2 + $0x228] sm:$0xff]  ;;  %v486_v23 = vld [vmem:[%s2026_s2 + $0x2a0] sm:$0xff] }
  0x59   : > { %v1266_v39 = vpop.eup %1265  ;;  %1138 = vmatprep.subr.mxu1 %v523_v15  ;;  %1095 = vmatpush3.msra.mxu0 %v475_v16  ;;  %1291 = vpow2.f32 %v390_v30  ;;  %v352_v41 = vmul.f32 1.442695, %v313_v31  ;;  %v229_v51 = vmax.f32 %v197_v38, 1e-06  ;;  %v231_v55 = vmax.f32 %v199_v43, 1e-06 }
  0x5a   : > { %v1268_v44 = vpop.eup %1267  ;;  %1139 = vmatpush3.msra.mxu1 %v507_v22  ;;  %1096 = vmatprep.subr.mxu0 %v490_v28  ;;  %1293 = vpow2.f32 %v348_v36  ;;  %v346_v46 = vmul.f32 1.442695, %v310_v37  ;;  %v238_v2 = vmax.f32 %v206_v52, 1e-06  ;;  %v240_v6 = vmax.f32 %v208_v56, 1e-06 }
  0x5b   : > { %v1270_v48 = vpop.eup %1269  ;;  %1140 = vmatprep.subr.mxu1 %v522_v29  ;;  %1097 = vmatpush3.msra.mxu0 %v474_v34  ;;  %1295 = vpow2.f32 %v352_v41  ;;  %v254_v50 = vmul.f32 0.6931472, %v1268_v44  ;;  %v205_v15 = vld [vmem:[%s1638_s13 + $0xe0] sm:$0xff]  ;;  %v503_v18 = vld [vmem:[%s2026_s2 + $0x328] sm:$0xff]  ;;  %v517_v37 = vld [vmem:[%s2026_s2 + $0x398] sm:$0xff] }
  0x5c   : > { %v1272_v53 = vpop.eup %1271  ;;  %1141 = vmatpush3.msra.mxu1 %v506_v35  ;;  %1098 = vmatprep.subr.mxu0 %v489_v40  ;;  %1297 = vpow2.f32 %v346_v46  ;;  %v470_v28 = vld [vmem:[%s2026_s2 + $0x220] sm:$0xff]  ;;  %v237_v30 = vmax.f32 %v205_v15, 1e-06  ;;  %v501_v41 = vld [vmem:[%s2026_s2 + $0x318] sm:$0xff]  ;;  %v484_v43 = vld [vmem:[%s2026_s2 + $0x290] sm:$0xff] }
  0x5d   : > { %v1274_v57 = vpop.eup %1273  ;;  %1142 = vmatprep.subr.mxu1 %v521_v45  ;;  %599 = vmatprep.mubr.f32.mxu0 %v1260_v21  ;;  %v312_v61 = vmul.f32 %v1720_v17, %v254_v50  ;;  %1299 = vlog2.f32 %v230_v42  ;;  %v207_v21 = vld [vmem:[%s1638_s13 + $0xf0] sm:$0xff]  ;;  %v502_v32 = vld [vmem:[%s2026_s2 + $0x320] sm:$0xff]  ;;  %v515_v52 = vld [vmem:[%s2026_s2 + $0x388] sm:$0xff]  ;;  %s167_s13 = scalar_lea.vmem [#allocation3], %s983_s28 }
  0x5e   : > { %v1276_v62 = vpop.eup %1275  ;;  %684 = vmatprep.mubr.f32.mxu1 %v1262_v27  ;;  %1099 = vmatpush3.msra.mxu0 %v473_v49  ;;  %v268_v1 = vmul.f32 0.6931472, %v1274_v57  ;;  %1301 = vlog2.f32 %v232_v47  ;;  %v518_v27 = vld [vmem:[%s2026_s2 + $0x3a0] sm:$0xff]  ;;  %v239_v35 = vmax.f32 %v207_v21, 1e-06  ;;  %v516_v45 = vld [vmem:[%s2026_s2 + $0x390] sm:$0xff] }
  0x5f   : > { %v1278_v3 = vpop.eup %1277  ;;  %1143 = vmatpush3.msra.mxu1 %v505_v54  ;;  %600 = vmatmul.mubr.f32.gmra.mxu0 %v1264_v33  ;;  %v350_v4 = vmul.f32 1.442695, %v312_v61  ;;  %v272_v5 = vmul.f32 0.6931472, %v1276_v62  ;;  %1303 = vlog2.f32 %v229_v51  ;;  %v485_v33 = vld [vmem:[%s2026_s2 + $0x298] sm:$0xff]  ;;  %v468_v46 = vld [vmem:[%s2026_s2 + $0x210] sm:$0xff] }
  0x60   : > { %v1280_v7 = vpop.eup %1279  ;;  %685 = vmatmul.mubr.f32.gmra.mxu1 %v1266_v39  ;;  %1100 = vmatprep.subr.mxu0 %v488_v58  ;;  %v319_v9 = vmul.f32 %v1720_v17, %v268_v1  ;;  %v266_v10 = vmul.f32 0.6931472, %v1278_v3  ;;  %1305 = vlog2.f32 %v231_v55  ;;  %v469_v39 = vld [vmem:[%s2026_s2 + $0x218] sm:$0xff]  ;;  %v483_v49 = vld [vmem:[%s2026_s2 + $0x288] sm:$0xff]  ;;  %v482_v57 = vld [vmem:[%s2026_s2 + $0x280] sm:$0xff]  ;;  %s917_s8 = sshll.u32 %s167_s13, 4  ;;  %s1981_s8 = int_to_ptr.vmem [resolvable:$true] %s917_s8 }
  0x61   : > { %v1282_v11 = vpop.eup %1281  ;;  %1144 = vmatprep.subr.mxu1 %v520_v59  ;;  %1101 = vmatpush3.msra.mxu0 %v472_v60  ;;  %1307 = vpow2.f32 %v350_v4  ;;  %v321_v13 = vmul.f32 %v1720_v17, %v272_v5  ;;  %v270_v14 = vmul.f32 0.6931472, %v1280_v7  ;;  %v499_v56 = vld [vmem:[%s2026_s2 + $0x308] sm:$0xff]  ;;  %v514_v61 = vld [vmem:[%s2026_s2 + $0x380] sm:$0xff]  ;;  %s1359_s18 = scalar_lea.vmem %s1981_s8, 512  ;;  %p1366_p0 = scmp.lt.s32.totalorder %s1981_s8, %s1364_s20 }
  0x62   : > { %v1284_v16 = vpop.eup %1283  ;;  %1145 = vmatpush3.msra.mxu1 %v504_v63  ;;  %1102 = vmatprep.subr.mxu0 %v487_v0  ;;  %v364_v19 = vmul.f32 1.442695, %v319_v9  ;;  %v318_v20 = vmul.f32 %v1720_v17, %v266_v10  ;;  %1309 = vlog2.f32 %v238_v2  ;;  %v466_v62 = vld [vmem:[%s2026_s2 + $0x200] sm:$0xff]  ;;  %p1360_p11 = scmp.ne.s32.totalorder %s1981_s8, %s1359_s18  ;;  %p1367_p1 = scmp.lt.s32.totalorder %s1365_s21, %s1359_s18 }
  0x63   : > { %v1286_v22 = vpop.eup %1285  ;;  %1146 = vmatprep.subr.mxu1 %v519_v8  ;;  %604 = vmatprep.mubr.f32.mxu0 %v1270_v48  ;;  %v368_v24 = vmul.f32 1.442695, %v321_v13  ;;  %v320_v25 = vmul.f32 %v1720_v17, %v270_v14  ;;  %1311 = vlog2.f32 %v240_v6  ;;  %v500_v48 = vld [vmem:[%s2026_s2 + $0x310] sm:$0xff]  ;;  %v498_v2 = vld [vmem:[%s2026_s2 + $0x300] sm:$0xff] }
  0x64   : > { %v1288_v26 = vpop.eup %1287  ;;  %689 = vmatprep.mubr.f32.mxu1 %v1272_v53  ;;  %1103 = vmatpush3.msra.mxu0 %v471_v12  ;;  %1313 = vpow2.f32 %v364_v19  ;;  %v362_v29 = vmul.f32 1.442695, %v318_v20  ;;  %v467_v53 = vld [vmem:[%s2026_s2 + $0x208] sm:$0xff]  ;;  %p1361_p12 = pnand %p1360_p11, %p1485_p5  ;;  %p1368_p2 = por %p1367_p1, %p1366_p0 }
  0x65   : > { %v1290_v31 = vpop.eup %1289  ;;  %1147 = vmatpush3.msra.mxu1 %v503_v18  ;;  %605 = vmatmul.mubr.f32.gmra.mxu0 %v1282_v11  ;;  %1315 = vpow2.f32 %v368_v24  ;;  %v366_v34 = vmul.f32 1.442695, %v320_v25 }
  0x66   : > { %v1292_v36 = vpop.eup %1291  ;;  %690 = vmatmul.mubr.f32.gmra.mxu1 %v1284_v16  ;;  %1104 = vmatprep.subr.mxu0 %v486_v23  ;;  %1317 = vpow2.f32 %v362_v29  ;;  %p1362_p13 = pneg %p1361_p12 }
  0x67   : > { %v1914_v38 = vpop.eup %1293  ;;  %1148 = vmatprep.subr.mxu1 %v518_v27  ;;  %1105 = vmatpush3.msra.mxu0 %v470_v28  ;;  %1319 = vpow2.f32 %v366_v34 }
  0x68   : > { %v1919_v40 = vpop.eup %1295  ;;  %1149 = vmatpush3.msra.mxu1 %v502_v32  ;;  %1106 = vmatprep.subr.mxu0 %v485_v33  ;;  %1321 = vlog2.f32 %v237_v30  ;;  %p1369_p3 = pnand %p1368_p2, %p1362_p13 }
  0x69   : > { %v1298_v42 = vpop.eup %1297  ;;  %1150 = vmatprep.subr.mxu1 %v517_v37  ;;  %609 = vmatprep.mubr.f32.mxu0 %v1286_v22  ;;  %1323 = vlog2.f32 %v239_v35 }
  0x6a   : > { %v1300_v44 = vpop.eup %1299  ;;  %694 = vmatprep.mubr.f32.mxu1 %v1288_v26  ;;  %1107 = vmatpush3.msra.mxu0 %v469_v39 }
  0x6b   : > { %v1302_v47 = vpop.eup %1301  ;;  %1151 = vmatpush3.msra.mxu1 %v501_v41  ;;  %610 = vmatmul.mubr.f32.gmra.mxu0 %v1290_v31  ;;  %v284_v50 = vmul.f32 0.6931472, %v1300_v44 }
  0x6c   : > { %v1304_v51 = vpop.eup %1303  ;;  %695 = vmatmul.mubr.f32.gmra.mxu1 %v1292_v36  ;;  %1108 = vmatprep.subr.mxu0 %v484_v43  ;;  %v288_v54 = vmul.f32 0.6931472, %v1302_v47 }
  0x6d   : > { %v1306_v55 = vpop.eup %1305  ;;  %1152 = vmatprep.subr.mxu1 %v516_v45  ;;  %1109 = vmatpush3.msra.mxu0 %v468_v46  ;;  %v327_v58 = vmul.f32 %v1720_v17, %v284_v50  ;;  %v282_v59 = vmul.f32 0.6931472, %v1304_v51 }
  0x6e   : > { %v1308_v60 = vpop.eup %1307  ;;  %1153 = vmatpush3.msra.mxu1 %v500_v48  ;;  %1110 = vmatprep.subr.mxu0 %v483_v49  ;;  %v329_v63 = vmul.f32 %v1720_v17, %v288_v54  ;;  %v286_v0 = vmul.f32 0.6931472, %v1306_v55 }
  0x6f   : > { %v1310_v1 = vpop.eup %1309  ;;  %1154 = vmatprep.subr.mxu1 %v515_v52  ;;  %1111 = vmatpush3.msra.mxu0 %v467_v53  ;;  %v380_v3 = vmul.f32 1.442695, %v327_v58  ;;  %v326_v4 = vmul.f32 %v1720_v17, %v282_v59 }
  0x70   : > { %v1312_v5 = vpop.eup %1311  ;;  %1155 = vmatpush3.msra.mxu1 %v499_v56  ;;  %1112 = vmatprep.subr.mxu0 %v482_v57  ;;  %v384_v6 = vmul.f32 1.442695, %v329_v63  ;;  %v328_v7 = vmul.f32 %v1720_v17, %v286_v0  ;;  %v300_v8 = vmul.f32 0.6931472, %v1310_v1 }
  0x71   : > { %v1314_v9 = vpop.eup %1313  ;;  %1156 = vmatprep.subr.mxu1 %v514_v61  ;;  %1113 = vmatpush3.msra.mxu0 %v466_v62  ;;  %1325 = vpow2.f32 %v380_v3  ;;  %v378_v10 = vmul.f32 1.442695, %v326_v4  ;;  %v304_v11 = vmul.f32 0.6931472, %v1312_v5 }
  0x72   : > { %v1316_v12 = vpop.eup %1315  ;;  %764 = vmatprep.mubr.f32.mxu0 %v1914_v38  ;;  %1157 = vmatpush3.msra.mxu1 %v498_v2  ;;  %1327 = vpow2.f32 %v384_v6  ;;  %v382_v13 = vmul.f32 1.442695, %v328_v7  ;;  %v335_v14 = vmul.f32 %v1720_v17, %v300_v8 }
  0x73   : > { %v1318_v15 = vpop.eup %1317  ;;  %849 = vmatprep.mubr.f32.mxu1 %v1919_v40  ;;  %765 = vmatmul.mubr.f32.vlgmr.msra.gmra.mxu0 %v1298_v42  ;;  %1329 = vpow2.f32 %v378_v10  ;;  %v337_v16 = vmul.f32 %v1720_v17, %v304_v11 }
  0x74   : > { %v1320_v18 = vpop.eup %1319  ;;  %850 = vmatmul.mubr.f32.vlgmr.msra.gmra.mxu1 %v1308_v60  ;;  %769 = vmatprep.mubr.f32.mxu0 %v1314_v9  ;;  %1331 = vpow2.f32 %v382_v13  ;;  %v396_v19 = vmul.f32 1.442695, %v335_v14 }
  0x75   : > { %v1322_v20 = vpop.eup %1321  ;;  %854 = vmatprep.mubr.f32.mxu1 %v1316_v12  ;;  %v400_v21 = vmul.f32 1.442695, %v337_v16 }
  0x76   : > { %v1324_v22 = vpop.eup %1323  ;;  %1333 = vpow2.f32 %v396_v19  ;;  %v298_v23 = vmul.f32 0.6931472, %v1322_v20 }
  0x77   : > { %770 = vmatmul.mubr.f32.gmra.mxu0 %v1318_v15  ;;  %1335 = vpow2.f32 %v400_v21  ;;  %v302_v24 = vmul.f32 0.6931472, %v1324_v22 }
  0x78   : > { %855 = vmatmul.mubr.f32.gmra.mxu1 %v1320_v18  ;;  %v334_v25 = vmul.f32 %v1720_v17, %v298_v23 }
  0x79   : > { %v336_v26 = vmul.f32 %v1720_v17, %v302_v24 }
  0x7a   : > { %v394_v27 = vmul.f32 1.442695, %v334_v25 }
  0x7b   : > { %v398_v28 = vmul.f32 1.442695, %v336_v26 }
  0x7c   : > { %1337 = vpow2.f32 %v394_v27 }
  0x7d   : > { %1339 = vpow2.f32 %v398_v28 }
  0x7e   : > { %v1326_v29 = vpop.eup %1325  ;;  %1341 = vrcp.f32 %v1720_v17 }
  0x7f   : > { %v1328_v30 = vpop.eup %1327  ;;  %774 = vmatprep.mubr.f32.mxu0 %v1326_v29 }
  0x80   : > { %v1330_v31 = vpop.eup %1329  ;;  %859 = vmatprep.mubr.f32.mxu1 %v1328_v30 }
  0x81   : > { %v1332_v32 = vpop.eup %1331  ;;  %775 = vmatmul.mubr.f32.gmra.mxu0 %v1330_v31 }
  0x82   : > { %860 = vmatmul.mubr.f32.gmra.mxu1 %v1332_v32 }
  0x83   : > { %v1334_v33 = vpop.eup %1333 }
  0x84   : > { %v1336_v34 = vpop.eup %1335  ;;  %779 = vmatprep.mubr.f32.mxu0 %v1334_v33 }
  0x85   : > { %864 = vmatprep.mubr.f32.mxu1 %v1336_v34 }
  0x89   : > { %v1338_v35 = vpop.eup %1337 }
  0x8a   : > { %v1340_v36 = vpop.eup %1339  ;;  %780 = vmatmul.mubr.f32.gmra.mxu0 %v1338_v35 }
  0x8b   : > { %865 = vmatmul.mubr.f32.gmra.mxu1 %v1340_v36  ;;  %v1342_v37 = vpop.eup %1341 }
  0x8c   : > { %1170 = vpush %v1342_v37 }
  0xbd   : > { %s1171_s5 = spop %1170 }
  0xbe   : > { %v885_v31 = vstv %s1171_s5 }
 0x10c   : > { %v1026_v38 = vpop.f32.mrf.mxu0 }
 0x10d   : > { %v1070_v39 = vpop.f32.mrf.mxu1 }
 0x10e   : > { %v1027_v40 = vpop.f32.mrf.mxu0 }
 0x10f   : > { %v1071_v41 = vpop.f32.mrf.mxu1  ;;  %v1028_v53 = vadd.f32 %v1027_v40, %v1026_v38 }
 0x110   : > { %v1072_v54 = vadd.f32 %v1071_v41, %v1070_v39 }
 0x112   : > { %v682_v58 = vadd.f32 %v1072_v54, %v1028_v53 }
 0x11f   : > { %v1029_v42 = vpop.f32.mrf.mxu0 }
 0x120   : > { %v1073_v43 = vpop.f32.mrf.mxu1 }
 0x121   : > { %v1030_v44 = vpop.f32.mrf.mxu0 }
 0x122   : > { %v1074_v45 = vpop.f32.mrf.mxu1  ;;  %v1031_v59 = vadd.f32 %v1030_v44, %v1029_v42 }
 0x123   : > { %v1075_v60 = vadd.f32 %v1074_v45, %v1073_v43 }
 0x125   : > { %v1032_v46 = vpop.f32.mrf.mxu0  ;;  %v687_v4 = vadd.f32 %v1075_v60, %v1031_v59 }
 0x126   : > { %v1076_v47 = vpop.f32.mrf.mxu1 }
 0x127   : > { %v1033_v48 = vpop.f32.mrf.mxu0 }
 0x128   : > { %v1077_v49 = vpop.f32.mrf.mxu1  ;;  %v1034_v12 = vadd.f32 %v1033_v48, %v1032_v46 }
 0x129   : > { %v1078_v13 = vadd.f32 %v1077_v49, %v1076_v47 }
 0x12b   : > { %v1035_v50 = vpop.f32.mrf.mxu0  ;;  %v692_v19 = vadd.f32 %v1078_v13, %v1034_v12 }
 0x12c   : > { %v1079_v51 = vpop.f32.mrf.mxu1 }
 0x12d   : > { %v1036_v52 = vpop.f32.mrf.mxu0 }
 0x12e   : > { %v1080_v17 = vpop.f32.mrf.mxu1  ;;  %v1037_v25 = vadd.f32 %v1036_v52, %v1035_v50 }
 0x12f   : > { %v1081_v26 = vadd.f32 %v1080_v17, %v1079_v51 }
 0x131   : > { %v697_v34 = vadd.f32 %v1081_v26, %v1037_v25 }
 0x133   : > { %v1114_v55 = vpop.f32.mrf.mxu0 }
 0x134   : > { %v1158_v56 = vpop.f32.mrf.mxu1 }
 0x135   : > { %v1115_v57 = vpop.f32.mrf.mxu0 }
 0x136   : > { %v1116_v61 = vadd.f32 %v1115_v57, %v1114_v55  ;;  %v1159_v62 = vpop.f32.mrf.mxu1 }
 0x137   : > { %v1117_v63 = vpop.f32.mrf.mxu0  ;;  %v1160_v1 = vadd.f32 %v1159_v62, %v1158_v56 }
 0x138   : > { %v767_v0 = vadd.f32 %v1116_v61, %v682_v58  ;;  %v1161_v2 = vpop.f32.mrf.mxu1 }
 0x139   : > { %v1118_v3 = vpop.f32.mrf.mxu0 }
 0x13a   : > { %v852_v5 = vadd.f32 %v1160_v1, %v767_v0  ;;  %v1119_v6 = vadd.f32 %v1118_v3, %v1117_v63  ;;  %v1162_v7 = vpop.f32.mrf.mxu1 }
 0x13b   : > { %v1163_v10 = vadd.f32 %v1162_v7, %v1161_v2 }
 0x13c   : > { %v870_v8 = vmax.f32 %v852_v5, 1e-35  ;;  %v772_v9 = vadd.f32 %v1119_v6, %v687_v4 }
 0x13e   : > { %1343 = vlog2.f32 %v870_v8  ;;  %v857_v11 = vadd.f32 %v1163_v10, %v772_v9 }
 0x140   : > { %v871_v14 = vmax.f32 %v857_v11, 1e-35 }
 0x141   : > { %v1120_v15 = vpop.f32.mrf.mxu0 }
 0x142   : > { %1345 = vlog2.f32 %v871_v14  ;;  %v1164_v16 = vpop.f32.mrf.mxu1 }
 0x143   : > { %v1121_v18 = vpop.f32.mrf.mxu0 }
 0x144   : > { %v1122_v20 = vadd.f32 %v1121_v18, %v1120_v15  ;;  %v1165_v21 = vpop.f32.mrf.mxu1 }
 0x145   : > { %v1166_v23 = vadd.f32 %v1165_v21, %v1164_v16 }
 0x146   : > { %v777_v22 = vadd.f32 %v1122_v20, %v692_v19 }
 0x148   : > { %v862_v24 = vadd.f32 %v1166_v23, %v777_v22 }
 0x14a   : > { %v872_v27 = vmax.f32 %v862_v24, 1e-35  ;;  %v1123_v28 = vpop.f32.mrf.mxu0 }
 0x14b   : > { %v1344_v29 = vpop.eup %1343  ;;  %v1167_v30 = vpop.f32.mrf.mxu1 }
 0x14c   : > { %1347 = vlog2.f32 %v872_v27  ;;  %v1124_v32 = vpop.f32.mrf.mxu0  ;;  %v875_v33 = vmul.f32 0.6931472, %v1344_v29 }
 0x14d   : > { %v1125_v35 = vadd.f32 %v1124_v32, %v1123_v28  ;;  %v1168_v36 = vpop.f32.mrf.mxu1 }
 0x14e   : > { %v886_v37 = vmul.f32 %v885_v31, %v875_v33  ;;  %v1169_v40 = vadd.f32 %v1168_v36, %v1167_v30 }
 0x14f   : > { %v1346_v38 = vpop.eup %1345  ;;  %v782_v39 = vadd.f32 %v1125_v35, %v697_v34 }
 0x150   : > { %v877_v41 = vmul.f32 0.6931472, %v1346_v38  ;;  %v890_v42 = vmul.f32 1.442695, %v886_v37 }
 0x151   : > { %v867_v43 = vadd.f32 %v1169_v40, %v782_v39 }
 0x152   : > { %v887_v44 = vmul.f32 %v885_v31, %v877_v41  ;;  %1349 = vpow2.f32 %v890_v42 }
 0x153   : > { %v873_v45 = vmax.f32 %v867_v43, 1e-35 }
 0x154   : > { %v892_v46 = vmul.f32 1.442695, %v887_v44 }
 0x155   : > { %1351 = vlog2.f32 %v873_v45 }
 0x156   : > { %1353 = vpow2.f32 %v892_v46 }
 0x159   : > { %v1348_v47 = vpop.eup %1347 }
 0x15a   : > { %v879_v48 = vmul.f32 0.6931472, %v1348_v47 }
 0x15c   : > { %v888_v49 = vmul.f32 %v885_v31, %v879_v48 }
 0x15e   : > { %v894_v50 = vmul.f32 1.442695, %v888_v49 }
 0x15f   : > { %v1350_v51 = vpop.eup %1349 }
 0x160   : > { %1355 = vpow2.f32 %v894_v50  ;;  %899 = vst.msk [vmem:[%s167_s13] sm:$0xff] %vm898_vm0, %v1350_v51 }
 0x162   : > { %v1352_v52 = vpop.eup %1351 }
 0x163   : > { %v1354_v53 = vpop.eup %1353  ;;  %v881_v54 = vmul.f32 0.6931472, %v1352_v52 }
 0x164   : > { %900 = vst.msk [vmem:[%s167_s13 + $0x8] sm:$0xff] %vm898_vm0, %v1354_v53 }
 0x165   : > { %v889_v17 = vmul.f32 %v885_v31, %v881_v54 }
 0x167   : > { %v896_v55 = vmul.f32 1.442695, %v889_v17 }
 0x169   : > { %1357 = vpow2.f32 %v896_v55 }
 0x16d   : > { %v1356_v56 = vpop.eup %1355 }
 0x16e   : > { %901 = vst.msk [vmem:[%s167_s13 + $0x10] sm:$0xff] %vm898_vm0, %v1356_v56 }
 0x176   : > { %v1358_v57 = vpop.eup %1357 }
 0x177   : > { %902 = vst.msk [vmem:[%s167_s13 + $0x18] sm:$0xff] %vm898_vm0, %v1358_v57 }
 0x178   : > { %1372 = shalt.err (!%p1369_p3)
}
 0x179   : > { %s1373_s26 = scalar_lea.hbm %s1979_s11, 512  ;;  %s1377_s25 = scalar_lea.hbm %s2027_s3, 1024 }
 0x17a   : > { %p1374_p4 = scmp.ne.s32.totalorder %s1979_s11, %s1373_s26  ;;  %p1378_p9 = scmp.lt.s32.totalorder %s1979_s11, %s2027_s3 }
 0x17b   : > { %p1379_p10 = scmp.lt.s32.totalorder %s1377_s25, %s1373_s26 }
 0x17c   : > { %p1375_p7 = pnand %p1374_p4, %p1485_p5 }
 0x17d   : > { %p1380_p11 = por %p1379_p10, %p1378_p9 }
 0x17e   : > { %p1376_p8 = pneg %p1375_p7 }
 0x180   : > { %p1381_p12 = pnand %p1380_p11, %p1376_p8 }
 0x182   : > { %1384 = shalt.err (!%p1381_p12)
}
 0x183   : > { %s1422_s5 = smov 128   ;;  %s1423_s6 = smov 8  }
 0x184   : > { %1172 = dma.vmem_to_hbm [thread:$0]  (%p1485_p5), %s1981_s8, 512, %s1979_s11, %s1984_s12, %s1422_s5, %s1422_s5, %s1423_s6  }
 0x185 PF: > { %p1178_p13 = scmp.ge.s32.totalorder %s1419_s17, 2  ;;  %s932_s28 = sand.u32 1, %s1407_s14  }
 0x186   : > { %s933_s13 = scalar_lea.sflag [#allocation4], %s932_s28 }
 0x187   : > { %p1175_p0 = pnand %p1178_p13, %p1489_p6 }
 0x189   : > { %p1176_p1 = pneg %p1175_p0 }
 0x18b   : > { %1402 = dma.done.wait (%p1176_p1), %s933_s13, 512  }
 0x18c   : > { %1404 = vsyncadd (%p1176_p1), %s933_s13, 4294966784  ;;  %p14_p2 = scmp.ge.s32.totalorder %s1472_s19, 4   ;;  %s2031_s14 = smov %s1411_s15 }
 0x18d   : > { %s2032_s15 = smov %s1415_s16  ;;  %s2033_s16 = smov %s1483_s22 }
 0x18e   : > { %s2034_s17 = smov %s1472_s19  ;;  %16 = sbr.rel (!%p14_p2) target bundleno = 5 (0x5), region = 67 }
 0x193   :  { %938 = vsyncpa [#allocation4], 1 }
 0x194   :  { %940 = vsyncpa [#allocation4 + $0x1], 1 }

</bundles_post_ra>
